<compile_context>
chip_gen: v7x
topology: tpu7x:2x2x1
jax: 0.10.0
libtpu: 0.0.40
codegen_flags: <defaults>
</compile_context>

<pallas_src>
import functools

import jax
import jax.numpy as jnp
import numpy as np
from jax import lax
from jax.experimental import pallas as pl
from jax.experimental.pallas import tpu as pltpu


def _gelu_exact(x):
    # Matches torch.nn.GELU() default (erf formulation).
    return 0.5 * x * (1.0 + lax.erf(x * (1.0 / np.sqrt(2.0))))


def _dsconv_kernel(x_ref, dw_ref, pw_ref, o_ref, xs_ref, *, H, W, Cin, Cout, d, pad):
    """One batch element per grid step, spatial flattened onto lanes.

    x_ref : (1, Cin, H*W)        input image (NCHW with HW flattened, lane-dense)
    dw_ref: (3, 3, Cin, 1)       depthwise weights
    pw_ref: (Cin, Cout, 1)       pointwise (1x1) weights
    o_ref : (1, Cout, H*W)       output (lane-dense stores)
    xs_ref: (Cin, H*W + 2*pad)   VMEM scratch: flat zero-padded copy of the image
    """
    S = H * W

    # Stage the image into the flat-padded scratch. Pads are re-zeroed every step (tiny, and
    # safe when the "parallel" grid axis is sharded across TensorCores with per-core scratch).
    xs_ref[:, :pad] = jnp.zeros((Cin, pad), jnp.float32)
    xs_ref[:, pad + S:] = jnp.zeros((Cin, pad), jnp.float32)
    xs_ref[:, pad:pad + S] = x_ref[0].astype(jnp.float32)

    # Column-validity masks for the +/-d width taps: a flat lane shift by +/-d would otherwise
    # pull in the neighbouring row's edge pixels. Computed once, outside the tap loops.
    col = lax.broadcasted_iota(jnp.int32, (Cin, S), 1) % W
    col_masks = {-d: col >= d, 0: None, d: col < W - d}

    # Depthwise 3x3 conv (stride 1, dilation d), vectorized over Cin on the VPU.
    dwv = dw_ref[...].astype(jnp.float32)            # (3, 3, Cin, 1), loaded once (hoisted)
    acc = None
    for kh in range(3):
        rh = (kh - 1) * d
        for kw in range(3):
            rw = (kw - 1) * d
            off = pad + rh * W + rw                  # static lane offset into the scratch
            tap = xs_ref[:, off:off + S]             # (Cin, S) load from VMEM scratch
            mask = col_masks[rw]
            if mask is not None:
                tap = jnp.where(mask, tap, 0.0)
            term = tap * dwv[kh, kw]                 # (Cin, S) * (Cin, 1)
            acc = term if acc is None else acc + term   # accumulator seeded from first tap
    y = _gelu_exact(acc)                             # (Cin, S)

    # Pointwise 1x1 conv as Cin broadcast-FMAs on the VPU (no tiny-K MXU matmul).
    pwv = pw_ref[...].astype(jnp.float32)            # (Cin, Cout, 1)
    z = None
    for ci in range(Cin):
        term = y[ci:ci + 1, :] * pwv[ci]             # (1, S) * (Cout, 1) -> (Cout, S)
        z = term if z is None else z + term
    z = _gelu_exact(z)                               # (Cout, S)

    o_ref[0] = z.astype(o_ref.dtype)                 # unmasked, lane-dense stores


def dsconv3x3_pallas(x_nchw, dw_torch, pw_torch, *, stride=1, dilation=1):
    """DSConv3x3 forward.

    x_nchw  : (N, Cin, H, W)      PyTorch NCHW input
    dw_torch: (Cin, 1, 3, 3)      depthwise conv weight (PyTorch layout)
    pw_torch: (Cout, Cin, 1, 1)   pointwise conv weight (PyTorch layout)
    Returns (N, Cout, H, W) in NCHW.
    """
    assert stride == 1, "only stride=1 implemented in the Pallas kernel"
    N, Cin, H, W = x_nchw.shape
    Cout = pw_torch.shape[0]
    d = dilation
    S = H * W

    # Free (contiguous) reshape: flatten spatial onto the lane axis.
    x_flat = x_nchw.reshape(N, Cin, S)
    # Tiny weight reformatting: (Cin,1,3,3) -> (3,3,Cin,1); (Cout,Cin,1,1) -> (Cin,Cout,1).
    dw = jnp.transpose(dw_torch[:, 0], (1, 2, 0))[..., None]
    pw = jnp.transpose(pw_torch[:, :, 0, 0], (1, 0))[..., None]

    # Flat pad must cover a +/- (d*W + d) shift; round up to a lane multiple so the interior
    # copy into the scratch is 128-aligned.
    pad = ((d * (W + 1) + 127) // 128) * 128

    kernel = functools.partial(
        _dsconv_kernel, H=H, W=W, Cin=Cin, Cout=Cout, d=d, pad=pad)

    flops = 2 * N * S * (9 * Cin + Cin * Cout)
    transcendentals = N * S * (Cin + Cout)           # one erf per GELU input element
    bytes_accessed = 4 * (x_flat.size + dw.size + pw.size + N * Cout * S)

    out_flat = pl.pallas_call(
        kernel,
        out_shape=jax.ShapeDtypeStruct((N, Cout, S), x_nchw.dtype),
        grid=(N,),
        in_specs=[
            pl.BlockSpec((1, Cin, S), lambda n: (n, 0, 0)),
            pl.BlockSpec((3, 3, Cin, 1), lambda n: (0, 0, 0, 0)),
            pl.BlockSpec((Cin, Cout, 1), lambda n: (0, 0, 0)),
        ],
        out_specs=pl.BlockSpec((1, Cout, S), lambda n: (n, 0, 0)),
        scratch_shapes=[pltpu.VMEM((Cin, S + 2 * pad), jnp.float32)],
        compiler_params=pltpu.CompilerParams(dimension_semantics=("parallel",)),
        cost_estimate=pl.CostEstimate(flops=flops,
                                      transcendentals=transcendentals,
                                      bytes_accessed=bytes_accessed),
    )(x_flat, dw, pw)

    # Free (contiguous) reshape back to NCHW.
    return out_flat.reshape(N, Cout, H, W)


def dsconv3x3_reference(x_nchw, dw_torch, pw_torch, *, dilation=1):
    """Pure-JAX NCHW reference mirroring the PyTorch module."""
    Cin = x_nchw.shape[1]
    d = dilation
    y = lax.conv_general_dilated(
        x_nchw, dw_torch,
        window_strides=(1, 1),
        padding=((d, d), (d, d)),
        rhs_dilation=(d, d),
        dimension_numbers=("NCHW", "OIHW", "NCHW"),
        feature_group_count=Cin,
    )
    y = _gelu_exact(y)
    z = lax.conv_general_dilated(
        y, pw_torch,
        window_strides=(1, 1),
        padding=((0, 0), (0, 0)),
        dimension_numbers=("NCHW", "OIHW", "NCHW"),
    )
    return _gelu_exact(z)


if __name__ == "__main__":
    key = jax.random.PRNGKey(0)
    k_x, k_dw, k_pw = jax.random.split(key, 3)

    N, Cin, H, W = 2, 4, 16, 16
    Cout = 8
    dilation = 1

    # PyTorch-convention NCHW input and weights (deterministic synthetic parameters).
    x = jax.random.normal(k_x, (N, Cin, H, W), dtype=jnp.float32)
    dw_torch = jax.random.normal(k_dw, (Cin, 1, 3, 3), dtype=jnp.float32) * 0.2
    pw_torch = jax.random.normal(k_pw, (Cout, Cin, 1, 1), dtype=jnp.float32) * 0.2

    out = dsconv3x3_pallas(x, dw_torch, pw_torch, stride=1, dilation=dilation)
    out = jax.block_until_ready(out)

    ref = dsconv3x3_reference(x, dw_torch, pw_torch, dilation=dilation)
    ref = jax.block_until_ready(ref)

    np.testing.assert_allclose(np.asarray(out), np.asarray(ref), rtol=1e-5, atol=1e-5)
    print("KERNEL_OK")
</pallas_src>

<mosaic_0001>
module attributes {stable_mosaic.version = 11 : i64} {
  func.func @_dsconv_kernel(%arg0: i32, %arg1: memref<1x4x256xf32, #tpu.memory_space<vmem>>, %arg2: memref<3x3x4x1xf32, #tpu.memory_space<vmem>>, %arg3: memref<4x8x1xf32, #tpu.memory_space<vmem>>, %arg4: memref<1x8x256xf32, #tpu.memory_space<vmem>>, %arg5: memref<4x512xf32, #tpu.memory_space<vmem>>) attributes {dimension_semantics = [#tpu.dimension_semantics<parallel>], iteration_bounds = array<i64: 2>, scalar_prefetch = 0 : i64, scratch_operands = 1 : i64, tpu.core_type = #tpu.core_type<tc>, window_params = [{transform_indices = @transform_0, window_bounds = array<i64: 1, 4, 256>}, {pipeline_mode = #tpu.pipeline_mode<synchronous>, transform_indices = @transform_1, window_bounds = array<i64: 3, 3, 4, 1>}, {pipeline_mode = #tpu.pipeline_mode<synchronous>, transform_indices = @transform_2, window_bounds = array<i64: 4, 8, 1>}, {transform_indices = @transform_3, window_bounds = array<i64: 1, 8, 256>}]} {
    %cst = arith.constant 0.000000e+00 : f32
    %0 = vector.broadcast %cst : f32 to vector<4x128xf32>
    %c0 = arith.constant 0 : index
    %c0_0 = arith.constant 0 : index
    %1 = vector.load %arg5[%c0, %c0_0] : memref<4x512xf32, #tpu.memory_space<vmem>>, vector<4x128xf32>
    tpu.vector_store %arg5[%c0, %c0_0], %0 {strides = array<i32>} : memref<4x512xf32, #tpu.memory_space<vmem>>, vector<4x128xf32>,
    %cst_1 = arith.constant 0.000000e+00 : f32
    %2 = vector.broadcast %cst_1 : f32 to vector<4x128xf32>
    %c0_2 = arith.constant 0 : index
    %c384 = arith.constant 384 : index
    %3 = vector.load %arg5[%c0_2, %c384] : memref<4x512xf32, #tpu.memory_space<vmem>>, vector<4x128xf32>
    tpu.vector_store %arg5[%c0_2, %c384], %2 {strides = array<i32>} : memref<4x512xf32, #tpu.memory_space<vmem>>, vector<4x128xf32>,
    %c0_3 = arith.constant 0 : index
    %c0_4 = arith.constant 0 : index
    %c0_5 = arith.constant 0 : index
    %4 = vector.load %arg1[%c0_3, %c0_4, %c0_5] : memref<1x4x256xf32, #tpu.memory_space<vmem>>, vector<1x4x256xf32>
    %5 = vector.shape_cast %4 : vector<1x4x256xf32> to vector<4x256xf32>
    %c0_6 = arith.constant 0 : index
    %c128 = arith.constant 128 : index
    %6 = vector.load %arg5[%c0_6, %c128] : memref<4x512xf32, #tpu.memory_space<vmem>>, vector<4x256xf32>
    tpu.vector_store %arg5[%c0_6, %c128], %5 {strides = array<i32>} : memref<4x512xf32, #tpu.memory_space<vmem>>, vector<4x256xf32>,
    %7 = tpu.iota {dimensions = array<i32: 1>} : vector<4x256xi32>
    %c16_i32 = arith.constant 16 : i32
    %c0_i32 = arith.constant 0 : i32
    %8 = arith.cmpi eq, %c16_i32, %c0_i32 : i32
    %c1_i32 = arith.constant 1 : i32
    %9 = arith.select %8, %c1_i32, %c16_i32 : i32
    %10 = vector.broadcast %9 : i32 to vector<4x256xi32>
    %11 = arith.remsi %7, %10 : vector<4x256xi32>
    %c0_i32_7 = arith.constant 0 : i32
    %12 = vector.broadcast %c0_i32_7 : i32 to vector<4x256xi32>
    %13 = arith.cmpi ne, %11, %12 : vector<4x256xi32>
    %c0_i32_8 = arith.constant 0 : i32
    %14 = vector.broadcast %c0_i32_8 : i32 to vector<4x256xi32>
    %15 = arith.cmpi slt, %11, %14 : vector<4x256xi32>
    %c0_i32_9 = arith.constant 0 : i32
    %16 = arith.cmpi slt, %9, %c0_i32_9 : i32
    %17 = vector.broadcast %16 : i1 to vector<4x256xi1>
    %18 = vector.broadcast %17 : vector<4x256xi1> to vector<4x256xi1>
    %19 = arith.xori %15, %18 : vector<4x256xi1>
    %20 = arith.andi %19, %13 : vector<4x256xi1>
    %21 = vector.broadcast %9 : i32 to vector<4x256xi32>
    %22 = arith.addi %11, %21 : vector<4x256xi32>
    %23 = arith.select %20, %22, %11 : vector<4x256xi1>, vector<4x256xi32>
    %c1_i32_10 = arith.constant 1 : i32
    %24 = vector.broadcast %c1_i32_10 : i32 to vector<4x256xi32>
    %25 = arith.cmpi sge, %23, %24 : vector<4x256xi32>
    %c15_i32 = arith.constant 15 : i32
    %26 = vector.broadcast %c15_i32 : i32 to vector<4x256xi32>
    %27 = arith.cmpi slt, %23, %26 : vector<4x256xi32>
    %c0_11 = arith.constant 0 : index
    %c0_12 = arith.constant 0 : index
    %c0_13 = arith.constant 0 : index
    %c0_14 = arith.constant 0 : index
    %28 = vector.load %arg2[%c0_11, %c0_12, %c0_13, %c0_14] : memref<3x3x4x1xf32, #tpu.memory_space<vmem>>, vector<3x3x4x1xf32>
    %c0_15 = arith.constant 0 : index
    %c111 = arith.constant 111 : index
    %29 = vector.load %arg5[%c0_15, %c111] : memref<4x512xf32, #tpu.memory_space<vmem>>, vector<4x256xf32>
    %cst_16 = arith.constant 0.000000e+00 : f32
    %30 = vector.broadcast %cst_16 : f32 to vector<4x256xf32>
    %31 = arith.select %25, %29, %30 : vector<4x256xi1>, vector<4x256xf32>
    %32 = vector.extract_strided_slice %28 {offsets = [0, 0, 0, 0], sizes = [1, 1, 4, 1], strides = [1, 1, 1, 1]} : vector<3x3x4x1xf32> to vector<1x1x4x1xf32>
    %33 = vector.shape_cast %32 : vector<1x1x4x1xf32> to vector<4x1xf32>
    %34 = vector.broadcast %33 : vector<4x1xf32> to vector<4x256xf32>
    %35 = arith.mulf %31, %34 : vector<4x256xf32>
    %c0_17 = arith.constant 0 : index
    %c112 = arith.constant 112 : index
    %36 = vector.load %arg5[%c0_17, %c112] : memref<4x512xf32, #tpu.memory_space<vmem>>, vector<4x256xf32>
    %37 = vector.extract_strided_slice %28 {offsets = [0, 1, 0, 0], sizes = [1, 1, 4, 1], strides = [1, 1, 1, 1]} : vector<3x3x4x1xf32> to vector<1x1x4x1xf32>
    %38 = vector.shape_cast %37 : vector<1x1x4x1xf32> to vector<4x1xf32>
    %39 = vector.broadcast %38 : vector<4x1xf32> to vector<4x256xf32>
    %40 = arith.mulf %36, %39 : vector<4x256xf32>
    %41 = arith.addf %35, %40 : vector<4x256xf32>
    %c0_18 = arith.constant 0 : index
    %c113 = arith.constant 113 : index
    %42 = vector.load %arg5[%c0_18, %c113] : memref<4x512xf32, #tpu.memory_space<vmem>>, vector<4x256xf32>
    %cst_19 = arith.constant 0.000000e+00 : f32
    %43 = vector.broadcast %cst_19 : f32 to vector<4x256xf32>
    %44 = arith.select %27, %42, %43 : vector<4x256xi1>, vector<4x256xf32>
    %45 = vector.extract_strided_slice %28 {offsets = [0, 2, 0, 0], sizes = [1, 1, 4, 1], strides = [1, 1, 1, 1]} : vector<3x3x4x1xf32> to vector<1x1x4x1xf32>
    %46 = vector.shape_cast %45 : vector<1x1x4x1xf32> to vector<4x1xf32>
    %47 = vector.broadcast %46 : vector<4x1xf32> to vector<4x256xf32>
    %48 = arith.mulf %44, %47 : vector<4x256xf32>
    %49 = arith.addf %41, %48 : vector<4x256xf32>
    %c0_20 = arith.constant 0 : index
    %c127 = arith.constant 127 : index
    %50 = vector.load %arg5[%c0_20, %c127] : memref<4x512xf32, #tpu.memory_space<vmem>>, vector<4x256xf32>
    %cst_21 = arith.constant 0.000000e+00 : f32
    %51 = vector.broadcast %cst_21 : f32 to vector<4x256xf32>
    %52 = arith.select %25, %50, %51 : vector<4x256xi1>, vector<4x256xf32>
    %53 = vector.extract_strided_slice %28 {offsets = [1, 0, 0, 0], sizes = [1, 1, 4, 1], strides = [1, 1, 1, 1]} : vector<3x3x4x1xf32> to vector<1x1x4x1xf32>
    %54 = vector.shape_cast %53 : vector<1x1x4x1xf32> to vector<4x1xf32>
    %55 = vector.broadcast %54 : vector<4x1xf32> to vector<4x256xf32>
    %56 = arith.mulf %52, %55 : vector<4x256xf32>
    %57 = arith.addf %49, %56 : vector<4x256xf32>
    %c0_22 = arith.constant 0 : index
    %c128_23 = arith.constant 128 : index
    %58 = vector.load %arg5[%c0_22, %c128_23] : memref<4x512xf32, #tpu.memory_space<vmem>>, vector<4x256xf32>
    %59 = vector.extract_strided_slice %28 {offsets = [1, 1, 0, 0], sizes = [1, 1, 4, 1], strides = [1, 1, 1, 1]} : vector<3x3x4x1xf32> to vector<1x1x4x1xf32>
    %60 = vector.shape_cast %59 : vector<1x1x4x1xf32> to vector<4x1xf32>
    %61 = vector.broadcast %60 : vector<4x1xf32> to vector<4x256xf32>
    %62 = arith.mulf %58, %61 : vector<4x256xf32>
    %63 = arith.addf %57, %62 : vector<4x256xf32>
    %c0_24 = arith.constant 0 : index
    %c129 = arith.constant 129 : index
    %64 = vector.load %arg5[%c0_24, %c129] : memref<4x512xf32, #tpu.memory_space<vmem>>, vector<4x256xf32>
    %cst_25 = arith.constant 0.000000e+00 : f32
    %65 = vector.broadcast %cst_25 : f32 to vector<4x256xf32>
    %66 = arith.select %27, %64, %65 : vector<4x256xi1>, vector<4x256xf32>
    %67 = vector.extract_strided_slice %28 {offsets = [1, 2, 0, 0], sizes = [1, 1, 4, 1], strides = [1, 1, 1, 1]} : vector<3x3x4x1xf32> to vector<1x1x4x1xf32>
    %68 = vector.shape_cast %67 : vector<1x1x4x1xf32> to vector<4x1xf32>
    %69 = vector.broadcast %68 : vector<4x1xf32> to vector<4x256xf32>
    %70 = arith.mulf %66, %69 : vector<4x256xf32>
    %71 = arith.addf %63, %70 : vector<4x256xf32>
    %c0_26 = arith.constant 0 : index
    %c143 = arith.constant 143 : index
    %72 = vector.load %arg5[%c0_26, %c143] : memref<4x512xf32, #tpu.memory_space<vmem>>, vector<4x256xf32>
    %cst_27 = arith.constant 0.000000e+00 : f32
    %73 = vector.broadcast %cst_27 : f32 to vector<4x256xf32>
    %74 = arith.select %25, %72, %73 : vector<4x256xi1>, vector<4x256xf32>
    %75 = vector.extract_strided_slice %28 {offsets = [2, 0, 0, 0], sizes = [1, 1, 4, 1], strides = [1, 1, 1, 1]} : vector<3x3x4x1xf32> to vector<1x1x4x1xf32>
    %76 = vector.shape_cast %75 : vector<1x1x4x1xf32> to vector<4x1xf32>
    %77 = vector.broadcast %76 : vector<4x1xf32> to vector<4x256xf32>
    %78 = arith.mulf %74, %77 : vector<4x256xf32>
    %79 = arith.addf %71, %78 : vector<4x256xf32>
    %c0_28 = arith.constant 0 : index
    %c144 = arith.constant 144 : index
    %80 = vector.load %arg5[%c0_28, %c144] : memref<4x512xf32, #tpu.memory_space<vmem>>, vector<4x256xf32>
    %81 = vector.extract_strided_slice %28 {offsets = [2, 1, 0, 0], sizes = [1, 1, 4, 1], strides = [1, 1, 1, 1]} : vector<3x3x4x1xf32> to vector<1x1x4x1xf32>
    %82 = vector.shape_cast %81 : vector<1x1x4x1xf32> to vector<4x1xf32>
    %83 = vector.broadcast %82 : vector<4x1xf32> to vector<4x256xf32>
    %84 = arith.mulf %80, %83 : vector<4x256xf32>
    %85 = arith.addf %79, %84 : vector<4x256xf32>
    %c0_29 = arith.constant 0 : index
    %c145 = arith.constant 145 : index
    %86 = vector.load %arg5[%c0_29, %c145] : memref<4x512xf32, #tpu.memory_space<vmem>>, vector<4x256xf32>
    %cst_30 = arith.constant 0.000000e+00 : f32
    %87 = vector.broadcast %cst_30 : f32 to vector<4x256xf32>
    %88 = arith.select %27, %86, %87 : vector<4x256xi1>, vector<4x256xf32>
    %89 = vector.extract_strided_slice %28 {offsets = [2, 2, 0, 0], sizes = [1, 1, 4, 1], strides = [1, 1, 1, 1]} : vector<3x3x4x1xf32> to vector<1x1x4x1xf32>
    %90 = vector.shape_cast %89 : vector<1x1x4x1xf32> to vector<4x1xf32>
    %91 = vector.broadcast %90 : vector<4x1xf32> to vector<4x256xf32>
    %92 = arith.mulf %88, %91 : vector<4x256xf32>
    %93 = arith.addf %85, %92 : vector<4x256xf32>
    %cst_31 = arith.constant 5.000000e-01 : f32
    %94 = vector.broadcast %cst_31 : f32 to vector<4x256xf32>
    %95 = arith.mulf %94, %93 : vector<4x256xf32>
    %cst_32 = arith.constant 0.707106769 : f32
    %96 = vector.broadcast %cst_32 : f32 to vector<4x256xf32>
    %97 = arith.mulf %93, %96 : vector<4x256xf32>
    %98 = math.erf %97 : vector<4x256xf32>
    %cst_33 = arith.constant 1.000000e+00 : f32
    %99 = vector.broadcast %cst_33 : f32 to vector<4x256xf32>
    %100 = arith.addf %99, %98 : vector<4x256xf32>
    %101 = arith.mulf %95, %100 : vector<4x256xf32>
    %c0_34 = arith.constant 0 : index
    %c0_35 = arith.constant 0 : index
    %c0_36 = arith.constant 0 : index
    %102 = vector.load %arg3[%c0_34, %c0_35, %c0_36] : memref<4x8x1xf32, #tpu.memory_space<vmem>>, vector<4x8x1xf32>
    %103 = vector.extract_strided_slice %101 {offsets = [0, 0], sizes = [1, 256], strides = [1, 1]} : vector<4x256xf32> to vector<1x256xf32>
    %104 = vector.extract_strided_slice %102 {offsets = [0, 0, 0], sizes = [1, 8, 1], strides = [1, 1, 1]} : vector<4x8x1xf32> to vector<1x8x1xf32>
    %105 = vector.shape_cast %104 : vector<1x8x1xf32> to vector<8x1xf32>
    %106 = vector.broadcast %103 : vector<1x256xf32> to vector<8x256xf32>
    %107 = vector.broadcast %105 : vector<8x1xf32> to vector<8x256xf32>
    %108 = arith.mulf %106, %107 : vector<8x256xf32>
    %109 = vector.extract_strided_slice %101 {offsets = [1, 0], sizes = [1, 256], strides = [1, 1]} : vector<4x256xf32> to vector<1x256xf32>
    %110 = vector.extract_strided_slice %102 {offsets = [1, 0, 0], sizes = [1, 8, 1], strides = [1, 1, 1]} : vector<4x8x1xf32> to vector<1x8x1xf32>
    %111 = vector.shape_cast %110 : vector<1x8x1xf32> to vector<8x1xf32>
    %112 = vector.broadcast %109 : vector<1x256xf32> to vector<8x256xf32>
    %113 = vector.broadcast %111 : vector<8x1xf32> to vector<8x256xf32>
    %114 = arith.mulf %112, %113 : vector<8x256xf32>
    %115 = arith.addf %108, %114 : vector<8x256xf32>
    %116 = vector.extract_strided_slice %101 {offsets = [2, 0], sizes = [1, 256], strides = [1, 1]} : vector<4x256xf32> to vector<1x256xf32>
    %117 = vector.extract_strided_slice %102 {offsets = [2, 0, 0], sizes = [1, 8, 1], strides = [1, 1, 1]} : vector<4x8x1xf32> to vector<1x8x1xf32>
    %118 = vector.shape_cast %117 : vector<1x8x1xf32> to vector<8x1xf32>
    %119 = vector.broadcast %116 : vector<1x256xf32> to vector<8x256xf32>
    %120 = vector.broadcast %118 : vector<8x1xf32> to vector<8x256xf32>
    %121 = arith.mulf %119, %120 : vector<8x256xf32>
    %122 = arith.addf %115, %121 : vector<8x256xf32>
    %123 = vector.extract_strided_slice %101 {offsets = [3, 0], sizes = [1, 256], strides = [1, 1]} : vector<4x256xf32> to vector<1x256xf32>
    %124 = vector.extract_strided_slice %102 {offsets = [3, 0, 0], sizes = [1, 8, 1], strides = [1, 1, 1]} : vector<4x8x1xf32> to vector<1x8x1xf32>
    %125 = vector.shape_cast %124 : vector<1x8x1xf32> to vector<8x1xf32>
    %126 = vector.broadcast %123 : vector<1x256xf32> to vector<8x256xf32>
    %127 = vector.broadcast %125 : vector<8x1xf32> to vector<8x256xf32>
    %128 = arith.mulf %126, %127 : vector<8x256xf32>
    %129 = arith.addf %122, %128 : vector<8x256xf32>
    %cst_37 = arith.constant 5.000000e-01 : f32
    %130 = vector.broadcast %cst_37 : f32 to vector<8x256xf32>
    %131 = arith.mulf %130, %129 : vector<8x256xf32>
    %cst_38 = arith.constant 0.707106769 : f32
    %132 = vector.broadcast %cst_38 : f32 to vector<8x256xf32>
    %133 = arith.mulf %129, %132 : vector<8x256xf32>
    %134 = math.erf %133 : vector<8x256xf32>
    %cst_39 = arith.constant 1.000000e+00 : f32
    %135 = vector.broadcast %cst_39 : f32 to vector<8x256xf32>
    %136 = arith.addf %135, %134 : vector<8x256xf32>
    %137 = arith.mulf %131, %136 : vector<8x256xf32>
    %c0_40 = arith.constant 0 : index
    %c0_41 = arith.constant 0 : index
    %c0_42 = arith.constant 0 : index
    %138 = vector.load %arg4[%c0_40, %c0_41, %c0_42] : memref<1x8x256xf32, #tpu.memory_space<vmem>>, vector<1x8x256xf32>
    %139 = vector.shape_cast %138 : vector<1x8x256xf32> to vector<8x256xf32>
    %140 = vector.shape_cast %137 : vector<8x256xf32> to vector<1x8x256xf32>
    tpu.vector_store %arg4[%c0_40, %c0_41, %c0_42], %140 {strides = array<i32>} : memref<1x8x256xf32, #tpu.memory_space<vmem>>, vector<1x8x256xf32>,
    return
  }
  func.func @transform_0(%arg0: i32) -> (i32, i32, i32) {
    %c0_i32 = arith.constant 0 : i32
    %c0_i32_0 = arith.constant 0 : i32
    %c0_i32_1 = arith.constant 0 : i32
    return %arg0, %c0_i32, %c0_i32_0 : i32, i32, i32
  }
  func.func @transform_1(%arg0: i32) -> (i32, i32, i32, i32) {
    %c0_i32 = arith.constant 0 : i32
    %c0_i32_0 = arith.constant 0 : i32
    %c0_i32_1 = arith.constant 0 : i32
    %c0_i32_2 = arith.constant 0 : i32
    %c0_i32_3 = arith.constant 0 : i32
    return %c0_i32, %c0_i32_0, %c0_i32_1, %c0_i32_2 : i32, i32, i32, i32
  }
  func.func @transform_2(%arg0: i32) -> (i32, i32, i32) {
    %c0_i32 = arith.constant 0 : i32
    %c0_i32_0 = arith.constant 0 : i32
    %c0_i32_1 = arith.constant 0 : i32
    %c0_i32_2 = arith.constant 0 : i32
    return %c0_i32, %c0_i32_0, %c0_i32_1 : i32, i32, i32
  }
  func.func @transform_3(%arg0: i32) -> (i32, i32, i32) {
    %c0_i32 = arith.constant 0 : i32
    %c0_i32_0 = arith.constant 0 : i32
    %c0_i32_1 = arith.constant 0 : i32
    return %arg0, %c0_i32, %c0_i32_0 : i32, i32, i32
  }
}

</mosaic_0001>

<bundles_post_ra>
// kernel: tpu_custom_call.1
= control target key start
LH: loop header
LB: loop body
LE: loop exit
PB: predicated region body
PF: predicated region fallthrough
CT: control target
= control target key end

     0   :  { %8 = vsyncpa [#allocation4], 0  ;;  %s1019_s0 = inlined_call_operand.vmem [shape: f32[2,4,256], index: 0, kind: input, shape index: {}]   ;;  %s1020_s1 = inlined_call_operand.vmem [shape: f32[3,3,4,1], index: 1, kind: input, shape index: {}]   ;;  %s1021_s2 = inlined_call_operand.vmem [shape: f32[4,8,1], index: 2, kind: input, shape index: {}]   ;;  %s1022_s3 = inlined_call_operand.hbm [shape: f32[2,8,256], index: 3, kind: output, shape index: {}]  }
   0x1   :  { %10 = vsyncpa [#allocation4 + $0x1], 0  ;;  %s794_s12 = smov 0   ;;  %s796_s13 = smov 0  }
   0x2   :  { %s798_s14 = smov 0   ;;  %s800_s15 = smov 0  }
   0x3 LB: > { %s815_s16 = sadd.s32 4294967295, %s760_s15   ;;  %s622_s17 = sadd.s32 4294967294, %s760_s15   ;;  %s760_s15 = sphi %s800_s15, %s1036_s15   ;;  %s756_s14 = sphi %s798_s14, %s1035_s14   ;;  %s752_s13 = sphi %s796_s13, %s1034_s13   ;;  %s748_s12 = sphi %s794_s12, %s1033_s12  }
   0x4   : > { %s819_s18 = sadd.s32 1, %s760_s15   ;;  %s91_s19 = sadd.s32 1, %s756_s14 }
   0x5   : > { %s88_s20 = ssub.s32 %s760_s15, %s819_s18  ;;  %p101_p0 = scmp.ne.s32.totalorder %s756_s14, %s752_s13 }
   0x6   : > { %p89_p1 = scmp.eq.s32.totalorder %s88_s20, 0  ;;  %p102_p2 = scmp.eq.s32.totalorder %s815_s16, 1 }
   0x7   : > { %p107_p3 = scmp.ne.s32.totalorder %s752_s13, %s748_s12  ;;  %p108_p4 = scmp.eq.s32.totalorder %s622_s17, 1 }
   0x8   : > { %s830_s21 = scalar_select %p89_p1, %s756_s14, %s91_s19  }
   0x9   : > { %p832_p5 = por %p102_p2, %p101_p0  ;;  %p836_p6 = por %p108_p4, %p107_p3 }
   0xa   : > { %p625_p7 = scmp.ge.s32.totalorder %s760_s15, 1  ;;  %p140_p8 = scmp.lt.s32.totalorder %s760_s15, 3 }
   0xc   : > { %p141_p9 = pnand %p625_p7, %p140_p8 }
   0xd   : > { %v205_v0 = vld [vmem:[%s1020_s1 + $0x4] sm:$0xf] (!%p141_p9)  ;;  %p164_p10 = scmp.lt.s32.totalorder (!%p141_p9), %s815_s16, 1  ;;  %v762_v1 = vmov (!%p141_p9), 0   ;;  %v204_v2 = vld [vmem:[%s1020_s1] sm:$0xf] (!%p141_p9)  ;;  %v173_v22 = vlaneseq (!%p141_p9) }
   0xe   : > { %144 = sbr.rel (%p141_p9) target bundleno = 341 (0x155), region = 32  ;;  %686 = vset.pattern.permute.xlu0 (!%p141_p9), %v762_v1  ;;  %687 = vset.pattern.permute.xlu1 (!%p141_p9), %v762_v1  ;;  %v211_v3 = vld [vmem:[%s1020_s1 + $0x1c] sm:$0xf] (!%p141_p9)  ;;  %v206_v4 = vld [vmem:[%s1020_s1 + $0x8] sm:$0xf] (!%p141_p9)  ;;  %v763_v5 = vmov (!%p141_p9), 0.0  }
   0xf   : > { %242 = vperm.xlu0 (!%p141_p9), %686, %v205_v0   ;;  %233 = vperm.xlu1 (!%p141_p9), %687, %v204_v2   ;;  %169 = vst [vmem:[#allocation2] sm:$0xf] (!%p141_p9), %v763_v5  ;;  %170 = vst [vmem:[#allocation2 + $0xc] sm:$0xf] (!%p141_p9), %v763_v5  ;;  %v208_v7 = vld [vmem:[%s1020_s1 + $0x10] sm:$0xf] (!%p141_p9) }
  0x10   : > { %v207_v8 = vld [vmem:[%s1020_s1 + $0xc] sm:$0xf] (!%p141_p9)  ;;  %s764_s20 = smov (!%p141_p9), 15   ;;  %s765_s24 = smov (!%p141_p9), 17   ;;  %v209_v13 = vld [vmem:[%s1020_s1 + $0x14] sm:$0xf] (!%p141_p9) }
  0x11   : > { %s766_s27 = smov (!%p141_p9), 1   ;;  %v210_v15 = vld [vmem:[%s1020_s1 + $0x18] sm:$0xf] (!%p141_p9)  ;;  %s767_s30 = smov (!%p141_p9), 127   ;;  %v212_v18 = vld [vmem:[%s1020_s1 + $0x20] sm:$0xf] (!%p141_p9) }
  0x12   : > { %v769_v20 = vmov (!%p141_p9), 839922192   ;;  %v881_v24 = vshrl.u32 (!%p141_p9), %v173_v22, 7  ;;  %s770_s7 = smov (!%p141_p9), 16   ;;  %s771_s8 = smov (!%p141_p9), 111   ;;  %v466_v39 = vld [vmem:[%s1021_s2] sm:$0xff] (!%p141_p9) }
  0x13   : > { %401 = vperm.xlu0 (!%p141_p9), %686, %v211_v3   ;;  %290 = vperm.xlu1 (!%p141_p9), %687, %v206_v4   ;;  %v245_v21 = vunpack.c.l.s4 (!%p141_p9), %v769_v20  ;;  %v467_v40 = vld [vmem:[%s1021_s2 + $0x8] sm:$0xff] (!%p141_p9)  ;;  %v468_v41 = vld [vmem:[%s1021_s2 + $0x10] sm:$0xff] (!%p141_p9)  ;;  %v469_v42 = vld [vmem:[%s1021_s2 + $0x18] sm:$0xff] (!%p141_p9)  ;;  %v174_v60 = vand.u32 (!%p141_p9), 127, %v173_v22  ;;  %vm224_vm0 = vcmask (!%p141_p9), 138240   ;;  %vm281_vm1 = vcmask (!%p141_p9), 121856  }
  0x14   : > { %vm308_vm4 = vcmask (!%p141_p9), 7168   ;;  %vm263_vm7 = vcmask (!%p141_p9), 130048   ;;  %vm354_vm8 = vcmask (!%p141_p9), 1039360   ;;  %vm381_vm9 = vcmask (!%p141_p9), 924672   ;;  %s635_s29 = sshll.u32 (!%p141_p9), %s815_s16, 8 }
  0x15   : > { %s165_s28 = scalar_select %p164_p10, %s815_s16, 1  ;;  %v246_v23 = vunpack.c.0.s8 %v245_v21  ;;  %v175_v62 = vadd.s32 128, %v174_v60  ;;  %v180_v0 = vand.u32 15, %v174_v60  ;;  %vm440_vm10 = vcmask 908288  }
  0x16   : > { %v344_v17 = vld [vmem:[#allocation2 + $0xc] sm:$0xf]  ;;  %vm422_vm11 = vcmask 916480  }
  0x17   : > { %s634_s6 = sshll.u32 %s165_s28, 3  ;;  %327 = vperm.xlu0 %686, %v208_v7   ;;  %317 = vperm.xlu1 %687, %v207_v8   ;;  %v371_v19 = vld [vmem:[#allocation2 + $0xc] sm:$0xf]  ;;  %v884_v25 = vsub.s32 %v246_v23, %v881_v24  ;;  %v187_v2 = vand.u32 15, %v175_v62  ;;  %vm910_vm2 = vcmp.ge.s32.totalorder %v180_v0, 1  ;;  %vm918_vm5 = vcmp.lt.s32.totalorder %v180_v0, 15 }
  0x18   : > { %s168_s9 = scalar_lea.vmem %s1019_s0, %s634_s6  ;;  %s768_s6 = smov 113   ;;  %v430_v34 = vld [vmem:[#allocation2 + $0xc] sm:$0xf] }
  0x19   : > { %v859_v6 = vld [vmem:[%s168_s9] sm:$0xff]  ;;  %v398_v36 = vld [vmem:[#allocation2 + $0xc] sm:$0xf]  ;;  %s772_s9 = smov 112   ;;  %vm914_vm3 = vcmp.ge.s32.totalorder %v187_v2, 1  ;;  %vm924_vm6 = vcmp.lt.s32.totalorder %v187_v2, 15 }
  0x1a   : > { %172 = vst [vmem:[#allocation2 + $0x4] sm:$0xff] %v859_v6  ;;  %v347_v16 = vcombine.high %v859_v6, %v859_v6 }
  0x21   : > { %v270_v9 = vld [vmem:[#allocation2] sm:$0xff]  ;;  %v214_v11 = vld [vmem:[#allocation2 + $0x8] sm:$0xf] }
  0x22   : > { %275 = vrot.lane.b32.xlu1 %v270_v9, %s764_s20  ;;  %v274_v10 = vcombine.high %v270_v9, %v270_v9  ;;  %218 = vrot.lane.b32.xlu0 %v270_v9, %s765_s24  ;;  %v271_v12 = vld [vmem:[#allocation2 + $0x8] sm:$0xf] }
  0x23   : > { %v298_v14 = vld [vmem:[#allocation2 + $0x8] sm:$0xf] }
  0x24   : > { %v239_v29 = vld [vmem:[#allocation2 + $0x8] sm:$0xf] }
  0x26   : > { %220 = vrot.lane.b32.xlu1 %v274_v10, %s765_s24  ;;  %222 = vrot.lane.b32.xlu0 %v214_v11, %s765_s24 }
  0x2a   : > { %279 = vrot.lane.b32.xlu1 %v271_v12, %s764_s20  ;;  %277 = vrot.lane.b32.xlu0 %v274_v10, %s764_s20 }
  0x2e   : > { %363 = vperm.xlu1 %687, %v209_v13   ;;  %302 = vrot.lane.b32.xlu0 %v270_v9, %s766_s27 }
  0x32   : > { %304 = vrot.lane.b32.xlu1 %v274_v10, %s766_s27  ;;  %306 = vrot.lane.b32.xlu0 %v298_v14, %s766_s27  ;;  %s161_s27 = sand.u32 1, %s752_s13  }
  0x33   : > { %s626_s28 = sshll.u32 %s161_s27, 4 }
  0x36   : > { %390 = vperm.xlu1 %687, %v210_v15   ;;  %348 = vrot.lane.b32.xlu0 %v859_v6, %s767_s30 }
  0x3a   : > { %350 = vrot.lane.b32.xlu1 %v347_v16, %s767_s30  ;;  %352 = vrot.lane.b32.xlu0 %v344_v17, %s767_s30  ;;  %s163_s30 = scalar_lea.vmem [#allocation3], %s626_s28 }
  0x3b   : > { %s563_s4 = sshll.u32 %s163_s30, 4  ;;  %s979_s4 = int_to_ptr.vmem [resolvable:$true] %s563_s4 }
  0x3c   : > { %s698_s16 = scalar_lea.vmem %s979_s4, 256 }
  0x3d   : > { %p699_p11 = scmp.ne.s32.totalorder %s979_s4, %s698_s16 }
  0x3e   : > { %449 = vperm.xlu1 %687, %v212_v18   ;;  %375 = vrot.lane.b32.xlu0 %v859_v6, %s768_s6 }
  0x3f   : > { %p700_p12 = pnand %p699_p11, %p832_p5 }
  0x41   : > { %p701_p13 = pneg %p700_p12 }
  0x42   : > { %379 = vrot.lane.b32.xlu0 %v371_v19, %s768_s6  ;;  %377 = vrot.lane.b32.xlu1 %v347_v16, %s768_s6 }
  0x8e   : > { %v243_v26 = vpop.permute.xlu0 %242  ;;  %v234_v43 = vpop.permute.xlu1 %233 }
  0x8f   : > { %v250_v27 = vrot.slane %v243_v26, %v884_v25 }
  0x91   : > { %v252_v28 = vmul.f32 %v270_v9, %v250_v27  ;;  %v253_v32 = vmul.f32 %v250_v27, %v239_v29 }
  0x92   : > { %v402_v31 = vpop.permute.xlu0 %401  ;;  %v291_v44 = vpop.permute.xlu1 %290 }
  0x93   : > { %257 = vrot.lane.b32.xlu0 %v252_v28, %s770_s7  ;;  %v256_v30 = vcombine.high %v252_v28, %v252_v28  ;;  %v409_v33 = vrot.slane %v402_v31, %v884_v25 }
  0x95   : > { %259 = vrot.lane.b32.xlu1 %v256_v30, %s770_s7  ;;  %v411_v35 = vmul.f32 %v409_v33, %v859_v6  ;;  %v412_v38 = vmul.f32 %v409_v33, %v398_v36 }
  0x96   : > { %v328_v45 = vpop.permute.xlu0 %327  ;;  %v902_v46 = vpop.permute.xlu1 %317 }
  0x97   : > { %261 = vrot.lane.b32.xlu0 %v253_v32, %s770_s7  ;;  %v415_v37 = vcombine.high %v411_v35, %v411_v35  ;;  %v335_v18 = vrot.slane %v328_v45, %v884_v25  ;;  %s977_s7 = scalar_lea.hbm %s1022_s3, %s635_s29 }
  0x99   : > { %434 = vrot.lane.b32.xlu1 %v859_v6, %s771_s8  ;;  %v337_v33 = vmul.f32 %v335_v18, %v859_v6 }
  0x9a   : > { %v219_v47 = vpop.permute.xlu0 %218  ;;  %v276_v48 = vpop.permute.xlu1 %275 }
  0x9b   : > { %436 = vrot.lane.b32.xlu0 %v347_v16, %s771_s8 }
  0x9d   : > { %438 = vrot.lane.b32.xlu1 %v430_v34, %s771_s8  ;;  %s549_s8 = scalar_lea.sflag [#allocation4], %s161_s27 }
  0x9e   : > { %v223_v49 = vpop.permute.xlu0 %222  ;;  %v221_v50 = vpop.permute.xlu1 %220 }
  0x9f   : > { %416 = vrot.lane.b32.xlu0 %v411_v35, %s772_s9  ;;  %v225_v4 = vsel %vm224_vm0, %v219_v47, %v221_v50  ;;  %v226_v8 = vsel %vm224_vm0, %v221_v50, %v223_v49  ;;  %v339_v49 = vcombine.high %v337_v33, %v337_v33 }
  0xa0   : > { %v229_v12 = vsel %vm910_vm2, %v225_v4, 0.0  ;;  %v230_v15 = vsel %vm914_vm3, %v226_v8, 0.0 }
  0xa1   : > { %418 = vrot.lane.b32.xlu1 %v415_v37, %s772_s9  ;;  %v236_v21 = vmul.f32 %v234_v43, %v229_v12  ;;  %v237_v26 = vmul.f32 %v234_v43, %v230_v15 }
  0xa2   : > { %v278_v51 = vpop.permute.xlu0 %277  ;;  %v280_v52 = vpop.permute.xlu1 %279 }
  0xa3   : > { %420 = vrot.lane.b32.xlu0 %v412_v38, %s772_s9  ;;  %v282_v10 = vsel %vm281_vm1, %v276_v48, %v278_v51  ;;  %v283_v14 = vsel %vm281_vm1, %v278_v51, %v280_v52  ;;  %s773_s9 = smov [#allocation3]  }
  0xa4   : > { %v286_v19 = vsel %vm918_vm5, %v282_v10, 0.0  ;;  %v287_v22 = vsel %vm924_vm6, %v283_v14, 0.0  ;;  %s702_s10 = sshll.u32 %s773_s9, 4  ;;  %s703_s10 = int_to_ptr.vmem [resolvable:$false] %s702_s10 }
  0xa5   : > { %480 = vperm.xlu1 %687, %v466_v39   ;;  %v293_v29 = vmul.f32 %v291_v44, %v286_v19  ;;  %v294_v34 = vmul.f32 %v291_v44, %v287_v22  ;;  %v472_v19 = vsub.s32 0, %v881_v24  ;;  %s704_s11 = scalar_lea.vmem %s703_s10, 512  ;;  %p705_p0 = scmp.lt.s32.totalorder %s979_s4, %s703_s10 }
  0xa6   : > { %v303_v53 = vpop.permute.xlu0 %302  ;;  %p706_p1 = scmp.lt.s32.totalorder %s704_s11, %s698_s16 }
  0xa7   : > { %495 = vperm.xlu0 %686, %v467_v40  }
  0xa8   : > { %p707_p2 = por %p706_p1, %p705_p0 }
  0xa9   : > { %512 = vperm.xlu1 %687, %v468_v41  }
  0xaa   : > { %v307_v55 = vpop.permute.xlu0 %306  ;;  %p708_p3 = pnand %p707_p2, %p701_p13 }
  0xab   : > { %529 = vperm.xlu0 %686, %v469_v42  }
  0xad   : > { %v904_v54 = vpop.permute.xlu1 %363 }
  0xae   : > { %v349_v57 = vpop.permute.xlu0 %348 }
  0xb1   : > { %v305_v56 = vpop.permute.xlu1 %304 }
  0xb2   : > { %v353_v59 = vpop.permute.xlu0 %352  ;;  %v309_v16 = vsel %vm308_vm4, %v303_v53, %v305_v56  ;;  %v310_v20 = vsel %vm308_vm4, %v305_v56, %v307_v55 }
  0xb3   : > { %v313_v27 = vsel %vm910_vm2, %v309_v16, 0.0  ;;  %v314_v25 = vsel %vm914_vm3, %v310_v20, 0.0 }
  0xb4   : > { %v320_v37 = vmul.f32 %v902_v46, %v313_v27  ;;  %v321_v42 = vmul.f32 %v902_v46, %v314_v25 }
  0xb5   : > { %v906_v58 = vpop.permute.xlu1 %390 }
  0xb6   : > { %v376_v63 = vpop.permute.xlu0 %375 }
  0xb9   : > { %v351_v61 = vpop.permute.xlu1 %350 }
  0xba   : > { %v380_v5 = vpop.permute.xlu0 %379  ;;  %v355_v30 = vsel %vm354_vm8, %v349_v57, %v351_v61  ;;  %v356_v35 = vsel %vm354_vm8, %v351_v61, %v353_v59 }
  0xbb   : > { %v359_v43 = vsel %vm918_vm5, %v355_v30, 0.0  ;;  %v360_v6 = vsel %vm924_vm6, %v356_v35, 0.0 }
  0xbc   : > { %v366_v51 = vmul.f32 %v904_v54, %v359_v43  ;;  %v367_v56 = vmul.f32 %v904_v54, %v360_v6 }
  0xbd   : > { %v908_v1 = vpop.permute.xlu1 %449 }
  0xc1   : > { %v378_v11 = vpop.permute.xlu1 %377 }
  0xc2   : > { %v382_v38 = vsel %vm381_vm9, %v376_v63, %v378_v11  ;;  %v383_v44 = vsel %vm381_vm9, %v378_v11, %v380_v5 }
  0xc3   : > { %v386_v50 = vsel %vm910_vm2, %v382_v38, 0.0  ;;  %v387_v57 = vsel %vm914_vm3, %v383_v44, 0.0 }
  0xc4   : > { %v393_v59 = vmul.f32 %v906_v58, %v386_v50  ;;  %v394_v2 = vmul.f32 %v906_v58, %v387_v57 }
 0x105   : > { %v258_v17 = vpop.permute.xlu0 %257 }
 0x107   : > { %v260_v23 = vpop.permute.xlu1 %259 }
 0x108   : > { %v264_v28 = vsel %vm263_vm7, %v258_v17, %v260_v23 }
 0x109   : > { %v268_v31 = vadd.f32 %v264_v28, %v236_v21  ;;  %v262_v32 = vpop.permute.xlu0 %261 }
 0x10a   : > { %v265_v36 = vsel %vm263_vm7, %v260_v23, %v262_v32  ;;  %v487_v23 = vsub.s32 1, %v881_v24 }
 0x10b   : > { %v295_v39 = vadd.f32 %v293_v29, %v268_v31  ;;  %v269_v40 = vadd.f32 %v265_v36, %v237_v26  ;;  %v435_v41 = vpop.permute.xlu1 %434  ;;  %v504_v26 = vsub.s32 2, %v881_v24 }
 0x10d   : > { %v322_v45 = vadd.f32 %v320_v37, %v295_v39  ;;  %v296_v47 = vadd.f32 %v294_v34, %v269_v40  ;;  %v437_v48 = vpop.permute.xlu0 %436 }
 0x10e   : > { %v441_v46 = vsel %vm440_vm10, %v435_v41, %v437_v48 }
 0x10f   : > { %v323_v52 = vadd.f32 %v321_v42, %v296_v47  ;;  %v439_v53 = vpop.permute.xlu1 %438  ;;  %v341_v55 = vadd.f32 %v337_v33, %v322_v45  ;;  %v445_v0 = vsel %vm918_vm5, %v441_v46, 0.0 }
 0x110   : > { %v442_v60 = vsel %vm440_vm10, %v437_v48, %v439_v53  ;;  %v452_v8 = vmul.f32 %v908_v1, %v445_v0 }
 0x111   : > { %v417_v61 = vpop.permute.xlu0 %416  ;;  %v368_v62 = vadd.f32 %v366_v51, %v341_v55  ;;  %v342_v63 = vadd.f32 %v339_v49, %v323_v52  ;;  %v446_v54 = vsel %vm924_vm6, %v442_v60, 0.0 }
 0x112   : > { %v453_v9 = vmul.f32 %v908_v1, %v446_v54  ;;  %v521_v1 = vsub.s32 3, %v881_v24 }
 0x113   : > { %v395_v3 = vadd.f32 %v393_v59, %v368_v62  ;;  %v419_v4 = vpop.permute.xlu1 %418  ;;  %v369_v5 = vadd.f32 %v367_v56, %v342_v63 }
 0x114   : > { %v423_v7 = vsel %vm422_vm11, %v417_v61, %v419_v4 }
 0x115   : > { %v427_v10 = vadd.f32 %v423_v7, %v395_v3  ;;  %v421_v11 = vpop.permute.xlu0 %420  ;;  %v396_v12 = vadd.f32 %v394_v2, %v369_v5 }
 0x116   : > { %v424_v14 = vsel %vm422_vm11, %v419_v4, %v421_v11 }
 0x117   : > { %v454_v15 = vadd.f32 %v452_v8, %v427_v10  ;;  %v428_v16 = vadd.f32 %v424_v14, %v396_v12 }
 0x119   : > { %v458_v58 = vmul.f32 0.70710677, %v454_v15  ;;  %v455_v17 = vadd.f32 %v453_v9, %v428_v16  ;;  %v456_v20 = vmul.f32 0.5, %v454_v15 }
 0x11b   : > { %690 = verf.f32 %v458_v58  ;;  %v459_v18 = vmul.f32 0.70710677, %v455_v17  ;;  %v457_v25 = vmul.f32 0.5, %v455_v17 }
 0x11d   : > { %692 = verf.f32 %v459_v18 }
 0x124   : > { %v481_v22 = vpop.permute.xlu1 %480 }
 0x125   : > { %v691_v13 = vpop.eup %690 }
 0x126   : > { %v462_v21 = vadd.f32 1.0, %v691_v13  ;;  %v496_v28 = vpop.permute.xlu0 %495 }
 0x127   : > { %v693_v27 = vpop.eup %692 }
 0x128   : > { %v464_v29 = vmul.f32 %v462_v21, %v456_v20  ;;  %v463_v30 = vadd.f32 1.0, %v693_v27  ;;  %v513_v40 = vpop.permute.xlu1 %512 }
 0x12a   : > { %v465_v31 = vmul.f32 %v463_v30, %v457_v25  ;;  %v473_v32 = vrot.slane %v464_v29, %v472_v19  ;;  %v488_v33 = vrot.slane %v464_v29, %v487_v23  ;;  %v505_v34 = vrot.slane %v464_v29, %v504_v26  ;;  %v530_v43 = vpop.permute.xlu0 %529 }
 0x12b   : > { %v522_v35 = vrot.slane %v464_v29, %v521_v1 }
 0x12c   : > { %v477_v36 = vrot.slane %v465_v31, %v472_v19  ;;  %v483_v37 = vmul.f32 %v481_v22, %v473_v32  ;;  %v492_v38 = vrot.slane %v465_v31, %v487_v23  ;;  %v498_v39 = vmul.f32 %v496_v28, %v488_v33 }
 0x12d   : > { %v509_v41 = vrot.slane %v465_v31, %v504_v26  ;;  %v515_v42 = vmul.f32 %v513_v40, %v505_v34  ;;  %v526_v45 = vrot.slane %v465_v31, %v521_v1  ;;  %v532_v50 = vmul.f32 %v530_v43, %v522_v35 }
 0x12e   : > { %v484_v6 = vmul.f32 %v481_v22, %v477_v36  ;;  %v499_v44 = vmul.f32 %v496_v28, %v492_v38  ;;  %v500_v24 = vadd.f32 %v498_v39, %v483_v37 }
 0x12f   : > { %v516_v48 = vmul.f32 %v513_v40, %v509_v41  ;;  %v533_v52 = vmul.f32 %v530_v43, %v526_v45 }
 0x130   : > { %v501_v47 = vadd.f32 %v499_v44, %v484_v6  ;;  %v517_v49 = vadd.f32 %v515_v42, %v500_v24 }
 0x132   : > { %v518_v51 = vadd.f32 %v516_v48, %v501_v47  ;;  %v534_v46 = vadd.f32 %v532_v50, %v517_v49 }
 0x134   : > { %v535_v53 = vadd.f32 %v533_v52, %v518_v51  ;;  %v538_v55 = vmul.f32 0.70710677, %v534_v46  ;;  %v536_v59 = vmul.f32 0.5, %v534_v46 }
 0x136   : > { %v539_v56 = vmul.f32 0.70710677, %v535_v53  ;;  %694 = verf.f32 %v538_v55  ;;  %v537_v62 = vmul.f32 0.5, %v535_v53 }
 0x138   : > { %696 = verf.f32 %v539_v56 }
 0x140   : > { %v695_v57 = vpop.eup %694 }
 0x141   : > { %v542_v60 = vadd.f32 1.0, %v695_v57 }
 0x142   : > { %v697_v61 = vpop.eup %696 }
 0x143   : > { %v543_v63 = vadd.f32 1.0, %v697_v61  ;;  %v544_v0 = vmul.f32 %v542_v60, %v536_v59 }
 0x145   : > { %v545_v2 = vmul.f32 %v543_v63, %v537_v62  ;;  %546 = vst [vmem:[%s163_s30] sm:$0xff] %v544_v0 }
 0x147   : > { %547 = vst [vmem:[%s163_s30 + $0x8] sm:$0xff] %v545_v2 }
 0x148   : > { %711 = shalt.err (!%p708_p3)
}
 0x149   : > { %s712_s17 = scalar_lea.hbm %s977_s7, 256  ;;  %s716_s24 = scalar_lea.hbm %s1022_s3, 512 }
 0x14a   : > { %p713_p4 = scmp.ne.s32.totalorder %s977_s7, %s712_s17  ;;  %p717_p9 = scmp.lt.u32.totalorder %s977_s7, %s1022_s3 }
 0x14b   : > { %p718_p10 = scmp.lt.u32.totalorder %s716_s24, %s712_s17  ;;  %p720_p12 = scmp.lt.u32.totalorder %s712_s17, %s977_s7 }
 0x14c   : > { %p714_p7 = pnand %p713_p4, %p832_p5 }
 0x14d   : > { %p719_p11 = por %p718_p10, %p717_p9 }
 0x14e   : > { %p715_p8 = pneg %p714_p7 }
 0x14f   : > { %p721_p13 = por %p720_p12, %p719_p11 }
 0x151   : > { %p722_p0 = pnand %p721_p13, %p715_p8 }
 0x153   : > { %725 = shalt.err (!%p722_p0)
}
 0x154   : > { %636 = dma.vmem_to_hbm [thread:$0]  (%p832_p5), %s979_s4, 256, %s977_s7, %s549_s8  }
 0x155 PF: > { %p642_p1 = scmp.ge.s32.totalorder %s760_s15, 2  ;;  %s575_s27 = sand.u32 1, %s748_s12  }
 0x156   : > { %s576_s28 = scalar_lea.sflag [#allocation4], %s575_s27 }
 0x157   : > { %p639_p2 = pnand %p642_p1, %p836_p6 }
 0x159   : > { %743 = dma.done.wait (!%p639_p2), %s576_s28, 256  }
 0x15a   : > { %745 = vsyncadd (!%p639_p2), %s576_s28, 4294967040  ;;  %p13_p3 = scmp.ge.s32.totalorder %s819_s18, 4   ;;  %s1033_s12 = smov %s752_s13 }
 0x15b   : > { %s1034_s13 = smov %s756_s14  ;;  %s1035_s14 = smov %s830_s21 }
 0x15c   : > { %s1036_s15 = smov %s819_s18  ;;  %15 = sbr.rel (!%p13_p3) target bundleno = 3 (0x3), region = 67 }
 0x163   :  { %581 = vsyncpa [#allocation4], 1 }
 0x164   :  { %583 = vsyncpa [#allocation4 + $0x1], 1 }

</bundles_post_ra>
